<compile_context>
chip_gen: v5e
topology: v5e:2x2
jax: 0.10.0
libtpu: 0.0.40
codegen_flags: <defaults>
</compile_context>

<pallas_src>
import functools
import math

import jax
import jax.numpy as jnp
from jax.experimental import pallas as pl
from jax.experimental.pallas import tpu as pltpu


def _round_up(x: int, m: int) -> int:
    return ((x + m - 1) // m) * m


def _pick_tile_n(n_rows: int) -> int:
    # Multiple of 16 so bf16 inputs (16-row sublane packing) stay legal.
    rounded = _round_up(n_rows, 16)
    if rounded <= 128:
        return rounded
    if n_rows < 1024:
        return 128   # keep >= 2 row blocks on short batches (v7x: both TCs busy)
    return 256


def _make_xent_kernel(pad_index: int, smoothing: float, vocab_size: int,
                      tile_v: int):
    """Row-loss kernel for one (pad_index, smoothing, V, TV) configuration."""
    ragged_v = (vocab_size % tile_v) != 0
    n_full = tile_v // 128          # number of full 128-lane chunks per tile
    rem = tile_v % 128              # remainder lanes (only when TV == V < cap)
    pad_tile = pad_index // tile_v  # vocab tile that holds the pad column
    pad_local = pad_index % tile_v

    if smoothing > 0.0:
        eps = smoothing / (vocab_size - 2)
        conf = 1.0 - smoothing
        # sum_v t_v * log(t_v) is a compile-time constant for every non-pad row.
        const = conf * math.log(conf) + smoothing * math.log(eps)

    def kernel(lp_ref, tgt_ref, row_ref, acc_ref):
        k = pl.program_id(1)

        @pl.when(k == 0)
        def _():
            acc_ref[...] = jnp.zeros_like(acc_ref)

        lp = lp_ref[...].astype(jnp.float32)                  # (TN, TV)
        tgt = tgt_ref[...]                                    # (TN, 1) int32

        # Loop-invariant local iota; shift the scalars instead of the tile.
        col = jax.lax.broadcasted_iota(jnp.int32, lp.shape, 1)
        tgt_local = tgt - k * tile_v                          # (TN, 1)

        if ragged_v and smoothing > 0.0:
            # Out-of-vocab lanes of the ragged last vocab tile may hold
            # garbage (NaN/Inf); select-mask BEFORE any multiply/reduce.
            lp = jnp.where(col < (vocab_size - k * tile_v), lp, 0.0)

        is_tgt = col == tgt_local
        if smoothing > 0.0:
            # One compare + one select + one multiply per element.
            w = jnp.where(is_tgt, conf, eps)
            prod = w * lp
        else:
            # Pure one-hot select (never matches garbage lanes: tgt < V).
            prod = jnp.where(is_tgt, lp, 0.0)

        # Lane-dense accumulation: VPU adds only; no per-tile XLU reduce.
        if n_full > 0:
            part = prod[:, 0:128]
            for j in range(1, n_full):
                part = part + prod[:, j * 128:(j + 1) * 128]
            acc_ref[...] += part
        if rem > 0:
            acc_ref[:, 0:1] += jnp.sum(prod[:, n_full * 128:],
                                       axis=-1, keepdims=True)

        if smoothing > 0.0:
            # Pad-column correction only on the single tile that contains it.
            @pl.when(k == pad_tile)
            def _():
                acc_ref[:, 0:1] += (-eps) * lp[:, pad_local:pad_local + 1]

        @pl.when(k == pl.num_programs(1) - 1)
        def _():
            total = jnp.sum(acc_ref[...], axis=-1, keepdims=True)  # (TN, 1)
            if smoothing > 0.0:
                row_loss = const - total
            else:
                row_loss = -total
            # Pad rows (and padded/garbage boundary rows) contribute exactly 0.
            row_ref[...] = jnp.where(tgt != pad_index, row_loss, 0.0)

    return kernel


@functools.partial(jax.jit, static_argnums=(2, 3))
def _xent_pallas(log_probs_2d, targets_1d, pad_index, smoothing):
    """log_probs_2d: (N, V) float; targets_1d: (N,) int32.

    Returns (per_row_losses[N], total_sum).
    """
    N, V = log_probs_2d.shape
    TN = _pick_tile_n(N)
    TV_CAP = 4096                       # multiple of 128; keeps blocks +
    TV = V if V <= TV_CAP else TV_CAP   # intermediates well inside VMEM
    n_row = pl.cdiv(N, TN)
    n_voc = pl.cdiv(V, TV)
    Np = n_row * TN

    if Np != N:
        # Only pad the tiny targets vector (with pad_index so extra rows give
        # exactly 0); the big (N, V) slab is never copied — ragged boundary
        # blocks are handled by masking inside the kernel.
        targets_1d = jnp.pad(targets_1d, (0, Np - N),
                             constant_values=pad_index)
    tgt_2d = targets_1d.reshape(Np, 1).astype(jnp.int32)

    kernel = _make_xent_kernel(pad_index, smoothing, V, TV)

    row_losses = pl.pallas_call(
        kernel,
        out_shape=jax.ShapeDtypeStruct((Np, 1), jnp.float32),
        grid_spec=pltpu.PrefetchScalarGridSpec(
            num_scalar_prefetch=0,
            grid=(n_row, n_voc),
            in_specs=[
                pl.BlockSpec((TN, TV), lambda i, k: (i, k)),
                pl.BlockSpec((TN, 1), lambda i, k: (i, 0)),
            ],
            out_specs=pl.BlockSpec((TN, 1), lambda i, k: (i, 0)),
            scratch_shapes=[
                # Single lane-dense running accumulator.
                pltpu.VMEM((TN, 128), jnp.float32),
            ],
        ),
        compiler_params=pltpu.CompilerParams(
            dimension_semantics=("parallel", "arbitrary"),
            vmem_limit_bytes=40 * 1024 * 1024,
        ),
    )(log_probs_2d, tgt_2d)

    row_losses = row_losses[:N, 0]
    # Scalar reduction outside the kernel keeps the row axis fully parallel.
    return row_losses, jnp.sum(row_losses)


class XentLoss:
    """Cross-entropy loss with optional label smoothing (forward pass only)."""

    def __init__(self, pad_index: int, smoothing: float = 0.0):
        self.pad_index = int(pad_index)
        self.smoothing = float(smoothing)

    def __call__(self, log_probs, targets, reduce=True):
        V = log_probs.shape[-1]
        lp2d = log_probs.reshape(-1, V)
        tgt1d = targets.reshape(-1).astype(jnp.int32)
        if reduce:
            _, total = _xent_pallas(lp2d, tgt1d, self.pad_index,
                                    self.smoothing)
            return total
        # reduce=False in the original module always uses
        # NLLLoss(reduction='none', ignore_index=pad), independent of smoothing.
        row_losses, _ = _xent_pallas(lp2d, tgt1d, self.pad_index, 0.0)
        return row_losses


def _reference(log_probs, targets, pad_index, smoothing):
    """Pure-JAX reference of the PyTorch forward (reduce=True)."""
    V = log_probs.shape[-1]
    lp = log_probs.reshape(-1, V).astype(jnp.float32)
    tgt = targets.reshape(-1)
    if smoothing > 0.0:
        eps = smoothing / (V - 2)
        conf = 1.0 - smoothing
        t = jnp.full_like(lp, eps)
        t = t.at[jnp.arange(lp.shape[0]), tgt].set(conf)
        t = t.at[:, pad_index].set(0.0)
        t = jnp.where((tgt != pad_index)[:, None], t, 0.0)
        safe_log_t = jnp.log(jnp.where(t > 0, t, 1.0))
        return jnp.sum(jnp.where(t > 0, t * (safe_log_t - lp), 0.0))
    gathered = jnp.take_along_axis(lp, tgt[:, None], axis=1)[:, 0]
    return jnp.sum(jnp.where(tgt != pad_index, -gathered, 0.0))


if __name__ == "__main__":
    key = jax.random.PRNGKey(0)
    pad_index = 1
    ok = True

    # (a) small single-tile vocab (mult. of 128); (b) larger single tile;
    # (c) vocab not a multiple of 128 (remainder-lane path);
    # (d) vocab > TV cap -> multi-tile vocab axis with a ragged last tile.
    configs = [
        (2, 8, 512),     # batch, seq, vocab
        (2, 5, 2176),
        (2, 4, 500),
        (2, 3, 8333),
    ]

    for batch, seq, vocab in configs:
        key, k1, k2 = jax.random.split(key, 3)
        logits = jax.random.normal(k1, (batch, seq, vocab), dtype=jnp.float32)
        log_probs = jax.nn.log_softmax(logits, axis=-1)
        targets = jax.random.randint(k2, (batch, seq), 0, vocab,
                                     dtype=jnp.int32)
        # Make a few positions padding so ignore_index is exercised.
        targets = targets.at[0, -2:].set(pad_index)
        targets = targets.at[1, -1:].set(pad_index)

        for smoothing in (0.0, 0.1):
            loss_fn = XentLoss(pad_index=pad_index, smoothing=smoothing)
            loss = loss_fn(log_probs, targets, reduce=True)
            jax.block_until_ready(loss)
            ref = _reference(log_probs, targets, pad_index, smoothing)
            if not jnp.allclose(loss, ref, rtol=1e-4, atol=1e-3):
                ok = False

        # No-reduce (per-position NLL) path — NLL 'none' regardless of smoothing.
        per_pos = XentLoss(pad_index=pad_index, smoothing=0.1)(
            log_probs, targets, reduce=False)
        jax.block_until_ready(per_pos)
        if per_pos.shape != (batch * seq,):
            ok = False
        gathered = jnp.take_along_axis(
            log_probs.reshape(-1, vocab),
            targets.reshape(-1, 1), axis=1)[:, 0]
        per_pos_ref = jnp.where(targets.reshape(-1) != pad_index, -gathered,
                                0.0)
        if not jnp.allclose(per_pos, per_pos_ref, rtol=1e-5, atol=1e-5):
            ok = False

    if ok:
        print("KERNEL_OK")
    else:
        print("KERNEL_MISMATCH")
</pallas_src>

<mosaic_0001>
module attributes {stable_mosaic.version = 11 : i64} {
  func.func @kernel(%arg0: i32, %arg1: i32, %arg2: memref<16x512xf32, #tpu.memory_space<vmem>>, %arg3: memref<16x1xi32, #tpu.memory_space<vmem>>, %arg4: memref<16x1xf32, #tpu.memory_space<vmem>>, %arg5: memref<16x128xf32, #tpu.memory_space<vmem>>) attributes {dimension_semantics = [#tpu.dimension_semantics<parallel>, #tpu.dimension_semantics<arbitrary>], iteration_bounds = array<i64: 1, 1>, scalar_prefetch = 0 : i64, scratch_operands = 1 : i64, tpu.core_type = #tpu.core_type<tc>, window_params = [{transform_indices = @transform_0, window_bounds = array<i64: 16, 512>}, {transform_indices = @transform_1, window_bounds = array<i64: 16, 1>}, {transform_indices = @transform_2, window_bounds = array<i64: 16, 1>}]} {
    %c0_i32 = arith.constant 0 : i32
    %0 = arith.cmpi eq, %arg1, %c0_i32 : i32
    %1 = arith.extui %0 : i1 to i32
    %c0_i32_0 = arith.constant 0 : i32
    %2 = arith.cmpi ne, %1, %c0_i32_0 : i32
    scf.if %2 {
      %cst_10 = arith.constant 0.000000e+00 : f32
      %26 = vector.broadcast %cst_10 : f32 to vector<16x128xf32>
      %c0_11 = arith.constant 0 : index
      %c0_12 = arith.constant 0 : index
      %27 = vector.load %arg5[%c0_11, %c0_12] : memref<16x128xf32, #tpu.memory_space<vmem>>, vector<16x128xf32>
      tpu.vector_store %arg5[%c0_11, %c0_12], %26 {strides = array<i32>} : memref<16x128xf32, #tpu.memory_space<vmem>>, vector<16x128xf32>,
    } else {
    }
    %c0 = arith.constant 0 : index
    %c0_1 = arith.constant 0 : index
    %3 = vector.load %arg2[%c0, %c0_1] : memref<16x512xf32, #tpu.memory_space<vmem>>, vector<16x512xf32>
    %c0_2 = arith.constant 0 : index
    %c0_3 = arith.constant 0 : index
    %4 = vector.load %arg3[%c0_2, %c0_3] : memref<16x1xi32, #tpu.memory_space<vmem>>, vector<16x1xi32>
    %5 = tpu.iota {dimensions = array<i32: 1>} : vector<16x512xi32>
    %c512_i32 = arith.constant 512 : i32
    %6 = arith.muli %arg1, %c512_i32 : i32
    %7 = vector.broadcast %6 : i32 to vector<16x1xi32>
    %8 = arith.subi %4, %7 : vector<16x1xi32>
    %9 = vector.broadcast %8 : vector<16x1xi32> to vector<16x512xi32>
    %10 = arith.cmpi eq, %5, %9 : vector<16x512xi32>
    %cst = arith.constant 0.000000e+00 : f32
    %11 = vector.broadcast %cst : f32 to vector<16x512xf32>
    %12 = arith.select %10, %3, %11 : vector<16x512xi1>, vector<16x512xf32>
    %13 = vector.extract_strided_slice %12 {offsets = [0, 0], sizes = [16, 128], strides = [1, 1]} : vector<16x512xf32> to vector<16x128xf32>
    %14 = vector.extract_strided_slice %12 {offsets = [0, 128], sizes = [16, 128], strides = [1, 1]} : vector<16x512xf32> to vector<16x128xf32>
    %15 = arith.addf %13, %14 : vector<16x128xf32>
    %16 = vector.extract_strided_slice %12 {offsets = [0, 256], sizes = [16, 128], strides = [1, 1]} : vector<16x512xf32> to vector<16x128xf32>
    %17 = arith.addf %15, %16 : vector<16x128xf32>
    %18 = vector.extract_strided_slice %12 {offsets = [0, 384], sizes = [16, 128], strides = [1, 1]} : vector<16x512xf32> to vector<16x128xf32>
    %19 = arith.addf %17, %18 : vector<16x128xf32>
    %c0_4 = arith.constant 0 : index
    %c0_5 = arith.constant 0 : index
    %20 = vector.load %arg5[%c0_4, %c0_5] : memref<16x128xf32, #tpu.memory_space<vmem>>, vector<16x128xf32>
    %21 = arith.addf %20, %19 : vector<16x128xf32>
    %c0_6 = arith.constant 0 : index
    %c0_7 = arith.constant 0 : index
    %22 = vector.load %arg5[%c0_6, %c0_7] : memref<16x128xf32, #tpu.memory_space<vmem>>, vector<16x128xf32>
    tpu.vector_store %arg5[%c0_6, %c0_7], %21 {strides = array<i32>} : memref<16x128xf32, #tpu.memory_space<vmem>>, vector<16x128xf32>,
    %c0_i32_8 = arith.constant 0 : i32
    %23 = arith.cmpi eq, %arg1, %c0_i32_8 : i32
    %24 = arith.extui %23 : i1 to i32
    %c0_i32_9 = arith.constant 0 : i32
    %25 = arith.cmpi ne, %24, %c0_i32_9 : i32
    scf.if %25 {
      %c0_10 = arith.constant 0 : index
      %c0_11 = arith.constant 0 : index
      %26 = vector.load %arg5[%c0_10, %c0_11] : memref<16x128xf32, #tpu.memory_space<vmem>>, vector<16x128xf32>
      %cst_12 = arith.constant dense<0.000000e+00> : vector<16xf32>
      %27 = vector.multi_reduction <add>, %26, %cst_12 [1] : vector<16x128xf32> to vector<16xf32>
      %28 = vector.shape_cast %27 : vector<16xf32> to vector<16x1xf32>
      %cst_13 = arith.constant 0.000000e+00 : f32
      %29 = vector.broadcast %cst_13 : f32 to vector<16x1xf32>
      %30 = arith.subf %29, %28 : vector<16x1xf32>
      %c1_i32 = arith.constant 1 : i32
      %31 = vector.broadcast %c1_i32 : i32 to vector<16x1xi32>
      %32 = arith.cmpi ne, %4, %31 : vector<16x1xi32>
      %cst_14 = arith.constant 0.000000e+00 : f32
      %33 = vector.broadcast %cst_14 : f32 to vector<16x1xf32>
      %34 = arith.select %32, %30, %33 : vector<16x1xi1>, vector<16x1xf32>
      %c0_15 = arith.constant 0 : index
      %c0_16 = arith.constant 0 : index
      %35 = vector.load %arg4[%c0_15, %c0_16] : memref<16x1xf32, #tpu.memory_space<vmem>>, vector<16x1xf32>
      tpu.vector_store %arg4[%c0_15, %c0_16], %34 {strides = array<i32>} : memref<16x1xf32, #tpu.memory_space<vmem>>, vector<16x1xf32>,
    } else {
    }
    return
  }
  func.func @transform_0(%arg0: i32, %arg1: i32) -> (i32, i32) {
    %c0_i32 = arith.constant 0 : i32
    return %arg0, %arg1 : i32, i32
  }
  func.func @transform_1(%arg0: i32, %arg1: i32) -> (i32, i32) {
    %c0_i32 = arith.constant 0 : i32
    %c0_i32_0 = arith.constant 0 : i32
    return %arg0, %c0_i32 : i32, i32
  }
  func.func @transform_2(%arg0: i32, %arg1: i32) -> (i32, i32) {
    %c0_i32 = arith.constant 0 : i32
    %c0_i32_0 = arith.constant 0 : i32
    return %arg0, %c0_i32 : i32, i32
  }
}

</mosaic_0001>

<bundles_post_ra>
// kernel: _xent_pallas.1
= control target key start
LH: loop header
LB: loop body
LE: loop exit
PB: predicated region body
PF: predicated region fallthrough
CT: control target
= control target key end

     0   :  { %7 = vsyncpa [#allocation4], 0  ;;  %s140_s12 = smov [#allocation3]   ;;  %s141_s14 = smov 512   ;;  %s174_s0 = inlined_call_operand.hbm [shape: f32[16,512], index: 0, kind: input, shape index: {}]   ;;  %s175_s1 = inlined_call_operand.vmem [shape: s32[16,1], index: 1, kind: input, shape index: {}]   ;;  %s176_s2 = inlined_call_operand.vmem [shape: f32[16,1], index: 2, kind: output, shape index: {}]  }
   0x1   :  { %s12_s11 = sshll.u32 %s174_s0, 4  ;;  %s14_s13 = sshll.u32 %s140_s12, 4  ;;  %s13_s11 = int_to_ptr.hbm [resolvable:$true] %s12_s11  ;;  %s15_s13 = int_to_ptr.vmem [resolvable:$true] %s14_s13 }
   0x2   :  { %s142_s15 = smov 32  }
   0x3   :  { %20 = dma.hbm_to_vmem [thread:$0]  %s13_s11, 1024, %s15_s13, [#allocation4], %s141_s14, %s141_s14, %s142_s15  }
   0x4   :  { %138 = dma.done.wait [#allocation4], 1024  }
   0x5   :  { %139 = vsyncadd [#allocation4], 4294966272  ;;  %v143_v0 = vmov 0   ;;  %v41_v1 = vld [vmem:[%s175_s1] sm:$0xff]  ;;  %v42_v2 = vld [vmem:[%s175_s1 + $0x8] sm:$0xff]  ;;  %v43_v3 = vlaneseq  ;;  %vm101_vm9 = vcmask 7168  }
   0x6   :  { %113 = vset.pattern.permute.xlu0 %v143_v0  ;;  %v33_v7 = vld [vmem:[#allocation3] sm:$0xff]  ;;  %v34_v8 = vld [vmem:[#allocation3 + $0x8] sm:$0xff]  ;;  %v35_v11 = vld [vmem:[#allocation3 + $0x10] sm:$0xff]  ;;  %vm97_vm8 = vcmp.ne.s32.totalorder %v41_v1, 1  ;;  %vm98_vm10 = vcmp.ne.s32.totalorder %v42_v2, 1 }
   0x7   :  { %53 = vperm.xlu0 %113, %v41_v1   ;;  %v44_v4 = vand.u32 127, %v43_v3  ;;  %v36_v14 = vld [vmem:[#allocation3 + $0x18] sm:$0xff]  ;;  %v37_v19 = vld [vmem:[#allocation3 + $0x20] sm:$0xff]  ;;  %v38_v20 = vld [vmem:[#allocation3 + $0x28] sm:$0xff] }
   0x8   :  { %v39_v23 = vld [vmem:[#allocation3 + $0x30] sm:$0xff]  ;;  %v40_v26 = vld [vmem:[#allocation3 + $0x38] sm:$0xff] }
   0x9   :  { %v45_v5 = vadd.s32 128, %v44_v4  ;;  %v46_v6 = vadd.s32 256, %v44_v4  ;;  %v47_v9 = vadd.s32 384, %v44_v4 }
   0xf   :  { %56 = vperm.xlu0 %113, %v42_v2  }
  0x79   :  { %v54_v10 = vpop.permute.xlu0 %53 }
  0x7a   :  { %vm58_vm0 = vcmp.eq.s32.totalorder %v44_v4, %v54_v10  ;;  %vm59_vm1 = vcmp.eq.s32.totalorder %v45_v5, %v54_v10  ;;  %vm60_vm2 = vcmp.eq.s32.totalorder %v46_v6, %v54_v10  ;;  %vm61_vm3 = vcmp.eq.s32.totalorder %v47_v9, %v54_v10 }
  0x7b   :  { %v66_v12 = vsel %vm58_vm0, %v33_v7, 0.0  ;;  %v67_v13 = vsel %vm59_vm1, %v34_v8, 0.0  ;;  %v68_v16 = vsel %vm60_vm2, %v35_v11, 0.0  ;;  %v69_v18 = vsel %vm61_vm3, %v36_v14, 0.0 }
  0x7c   :  { %v74_v15 = vadd.f32 %v67_v13, %v66_v12 }
  0x7e   :  { %v76_v17 = vadd.f32 %v74_v15, %v68_v16 }
  0x80   :  { %v78_v21 = vadd.f32 %v76_v17, %v69_v18 }
  0x81   :  { %v57_v22 = vpop.permute.xlu0 %56 }
  0x82   :  { %vm62_vm4 = vcmp.eq.s32.totalorder %v44_v4, %v57_v22  ;;  %vm63_vm5 = vcmp.eq.s32.totalorder %v45_v5, %v57_v22  ;;  %vm64_vm6 = vcmp.eq.s32.totalorder %v46_v6, %v57_v22  ;;  %91 = vadd.xlane.f32.xlu1 %v78_v21  ;;  %vm65_vm7 = vcmp.eq.s32.totalorder %v47_v9, %v57_v22 }
  0x83   :  { %v70_v24 = vsel %vm62_vm4, %v37_v19, 0.0  ;;  %v71_v25 = vsel %vm63_vm5, %v38_v20, 0.0  ;;  %v72_v28 = vsel %vm64_vm6, %v39_v23, 0.0  ;;  %v73_v30 = vsel %vm65_vm7, %v40_v26, 0.0 }
  0x84   :  { %v75_v27 = vadd.f32 %v71_v25, %v70_v24 }
  0x86   :  { %v77_v29 = vadd.f32 %v75_v27, %v72_v28 }
  0x88   :  { %v79_v31 = vadd.f32 %v77_v29, %v73_v30 }
  0x8a   :  { %93 = vadd.xlane.f32.xlu1 %v79_v31 }
  0xf5   :  { %v92_v32 = vpop.xlane.xlu1 %91 }
  0xf6   :  { %v95_v33 = vsub.f32 0.0, %v92_v32 }
  0xf8   :  { %v99_v34 = vsel %vm97_vm8, %v95_v33, 0.0 }
  0xf9   :  { %102 = vst.msk [vmem:[%s176_s2] sm:$0xff] %vm101_vm9, %v99_v34 }
  0xfd   :  { %v94_v35 = vpop.xlane.xlu1 %93 }
  0xfe   :  { %v96_v36 = vsub.f32 0.0, %v94_v35 }
 0x100   :  { %v100_v37 = vsel %vm98_vm10, %v96_v36, 0.0 }
 0x101   :  { %103 = vst.msk [vmem:[%s176_s2 + $0x8] sm:$0xff] %vm101_vm9, %v100_v37 }
 0x102   :  { %108 = vsyncpa [#allocation4], 1 }

</bundles_post_ra>
